<compile_context>
chip_gen: v7x
topology: tpu7x:2x2x1
jax: 0.10.0
libtpu: 0.0.40
codegen_flags: <defaults>
</compile_context>

<pallas_src>
import functools

import jax
import jax.numpy as jnp
import numpy as np
from jax import lax
from jax.experimental import pallas as pl
from jax.experimental.pallas import tpu as pltpu


# ---------------------------------------------------------------------------
# Generation-aware VMEM sizing.
# ---------------------------------------------------------------------------
@functools.lru_cache(maxsize=1)
def _physical_vmem_bytes() -> int:
    try:
        v = int(pltpu.get_tpu_info().vmem_capacity_bytes)
        if v >= (16 << 20):
            return v
    except Exception:
        pass
    return 64 << 20  # conservative default (v7x per-TensorCore VMEM)


@functools.lru_cache(maxsize=1)
def _vmem_limit_bytes() -> int:
    # ~3/4 of physical VMEM: 48 MiB on v7x (64 MiB phys), 96 MiB on v5e/v6e
    # (128 MiB phys).  Leaves headroom for compiler-internal scratch.
    return min((_physical_vmem_bytes() * 3) // 4, 112 << 20)


# ---------------------------------------------------------------------------
# Kernels.
# ---------------------------------------------------------------------------
def _linear_kres_kernel(x_ref, w_ref, b_ref, o_ref):
    """K-resident plan: full contraction in one shot, output written once."""
    # x: (tm, K), w: (tn, K) -> contract K with K (x @ w.T).  Transposed-RHS
    # contraction is MXU-native (same as flash-attention q @ k.T); no weight
    # transpose is materialized.
    acc = lax.dot_general(
        x_ref[...],
        w_ref[...],
        dimension_numbers=(((1,), (1,)), ((), ())),
        preferred_element_type=jnp.float32,
    )
    # b_ref is (1, tn); broadcasts over the tm rows.
    o_ref[...] = (acc + b_ref[...]).astype(o_ref.dtype)


def _linear_kred_kernel(x_ref, w_ref, b_ref, o_ref, acc_ref):
    """K-reduction plan: f32 VMEM accumulator, bias fused into first partial."""
    kk = pl.program_id(2)
    part = lax.dot_general(
        x_ref[...],
        w_ref[...],
        dimension_numbers=(((1,), (1,)), ((), ())),
        preferred_element_type=jnp.float32,
    )

    @pl.when(kk == 0)
    def _():
        acc_ref[...] = part + b_ref[...]  # bias fused; no separate init store

    @pl.when(kk != 0)
    def _():
        acc_ref[...] += part

    @pl.when(kk == pl.num_programs(2) - 1)
    def _():
        o_ref[...] = acc_ref[...].astype(o_ref.dtype)


# ---------------------------------------------------------------------------
# Tile selection.
# ---------------------------------------------------------------------------
def _largest_block(dim, cap, quantum):
    """Largest legal block size <= cap that tiles `dim` exactly."""
    if dim <= cap:
        return dim
    t = (cap // quantum) * quantum
    while t >= quantum:
        if dim % t == 0:
            return t
        t -= quantum
    # TODO(synk): masked epilogue for dims with no aligned divisor; fall back
    # to the whole axis (always layout-legal, may cost extra VMEM).
    return dim


def _select_plan(n, m, k, x_dtype, w_dtype, b_dtype, o_dtype):
    xb = jnp.dtype(x_dtype).itemsize
    wb = jnp.dtype(w_dtype).itemsize
    bb = jnp.dtype(b_dtype).itemsize
    ob = jnp.dtype(o_dtype).itemsize
    budget = _vmem_limit_bytes() - (4 << 20)  # headroom for sems/internal scratch

    # Plan A: whole K resident per tile -> 2-D, all-"parallel" grid.
    for cap in (512, 256, 128):
        tm_cap = cap
        # Mid-size shapes: force >= 2 row blocks so both v7x TensorCores work.
        if 256 <= n <= 2 * cap and n % 16 == 0:
            tm_cap = min(cap, n // 2)
        tm = _largest_block(n, tm_cap, 8)
        tn = _largest_block(m, cap, 128)
        ws = 2 * (tm * k * xb + tn * k * wb + tn * bb) + 2 * tm * tn * ob
        if ws <= budget:
            return ("kres", tm, tn, k)

    # Plan B: tile K as well; accumulate in an f32 VMEM scratch.
    tm = _largest_block(n, 512, 8)
    tn = _largest_block(m, 512, 128)
    for tk_cap in (2048, 1024, 512, 256, 128):
        tk = _largest_block(k, tk_cap, 128)
        ws = (2 * (tm * tk * xb + tn * tk * wb + tn * bb)
              + 2 * tm * tn * ob + tm * tn * 4)
        if ws <= budget:
            return ("kred", tm, tn, tk)
    return ("kred", tm, tn, _largest_block(k, 128, 128))


# ---------------------------------------------------------------------------
# pallas_call builders.
# ---------------------------------------------------------------------------
def _pallas_linear_kres(x, weight, b2d, tm, tn):
    n, k = x.shape
    m = weight.shape[0]
    assert n % tm == 0 and m % tn == 0, (n, m, tm, tn)
    grid = (n // tm, m // tn)
    return pl.pallas_call(
        _linear_kres_kernel,
        out_shape=jax.ShapeDtypeStruct((n, m), x.dtype),
        grid_spec=pltpu.PrefetchScalarGridSpec(
            num_scalar_prefetch=0,
            grid=grid,
            in_specs=[
                pl.BlockSpec((tm, k), lambda i, j: (i, 0)),   # x panel
                pl.BlockSpec((tn, k), lambda i, j: (j, 0)),   # W panel (no .T)
                pl.BlockSpec((1, tn), lambda i, j: (0, j)),   # bias tile
            ],
            out_specs=pl.BlockSpec((tm, tn), lambda i, j: (i, j)),
        ),
        compiler_params=pltpu.CompilerParams(
            dimension_semantics=("parallel", "parallel"),
            vmem_limit_bytes=_vmem_limit_bytes(),
        ),
    )(x, weight, b2d)


def _pallas_linear_kred(x, weight, b2d, tm, tn, tk):
    n, k = x.shape
    m = weight.shape[0]
    assert n % tm == 0 and m % tn == 0 and k % tk == 0, (n, m, k, tm, tn, tk)
    grid = (n // tm, m // tn, k // tk)
    return pl.pallas_call(
        _linear_kred_kernel,
        out_shape=jax.ShapeDtypeStruct((n, m), x.dtype),
        grid_spec=pltpu.PrefetchScalarGridSpec(
            num_scalar_prefetch=0,
            grid=grid,
            in_specs=[
                pl.BlockSpec((tm, tk), lambda i, j, kk: (i, kk)),  # x tile
                pl.BlockSpec((tn, tk), lambda i, j, kk: (j, kk)),  # W tile (no .T)
                pl.BlockSpec((1, tn), lambda i, j, kk: (0, j)),    # bias tile
            ],
            out_specs=pl.BlockSpec((tm, tn), lambda i, j, kk: (i, j)),
            scratch_shapes=[pltpu.VMEM((tm, tn), jnp.float32)],
        ),
        compiler_params=pltpu.CompilerParams(
            dimension_semantics=("parallel", "parallel", "arbitrary"),
            vmem_limit_bytes=_vmem_limit_bytes(),
        ),
    )(x, weight, b2d)


# ---------------------------------------------------------------------------
# Public wrapper: y = x @ weight.T + bias (torch.nn.Linear forward).
# ---------------------------------------------------------------------------
@jax.jit
def pallas_linear(x, weight, bias):
    """x: (..., K), weight: (M, K), bias: (M,) -> (..., M). Output dtype = x.dtype."""
    *lead, k = x.shape
    m, k2 = weight.shape
    assert k == k2, (k, k2)
    n = 1
    for d in lead:
        n *= d
    x2 = x.reshape(n, k)
    b2d = bias.reshape(1, m)

    # TODO(synk): optional bf16 input cast (f32 accumulate) for 3x+ MXU
    # throughput on v6e/v7x -- needs model-owner numerics signoff.
    plan, tm, tn, tk = _select_plan(n, m, k, x.dtype, weight.dtype,
                                    bias.dtype, x.dtype)
    if plan == "kres":
        y = _pallas_linear_kres(x2, weight, b2d, tm, tn)
    else:
        y = _pallas_linear_kred(x2, weight, b2d, tm, tn, tk)
    return y.reshape(*lead, m)


if __name__ == "__main__":
    # Model(m, k) == nn.Linear(k, m): weight (m, k), bias (m,)
    N, K, M = 16, 256, 128  # batch rows, in_features (k), out_features (m)

    key = jax.random.PRNGKey(0)
    kx, kw, kb = jax.random.split(key, 3)
    bound = 1.0 / (K ** 0.5)
    x = jax.random.normal(kx, (N, K), dtype=jnp.float32)
    weight = jax.random.uniform(kw, (M, K), jnp.float32, minval=-bound, maxval=bound)
    bias = jax.random.uniform(kb, (M,), jnp.float32, minval=-bound, maxval=bound)

    y = jax.block_until_ready(pallas_linear(x, weight, bias))
    y_ref = (np.asarray(x, np.float64) @ np.asarray(weight, np.float64).T
             + np.asarray(bias, np.float64))
    assert y.shape == (N, M)
    assert np.allclose(np.asarray(y), y_ref, rtol=1e-5, atol=1e-5)

    # Multi-block K-resident path (>= 2 row blocks, all-parallel grid).
    N2, K2, M2 = 256, 1024, 512
    k2x, k2w, k2b = jax.random.split(jax.random.PRNGKey(1), 3)
    bound2 = 1.0 / (K2 ** 0.5)
    x2 = jax.random.normal(k2x, (N2, K2), dtype=jnp.float32)
    w2 = jax.random.uniform(k2w, (M2, K2), jnp.float32, minval=-bound2, maxval=bound2)
    b2 = jax.random.uniform(k2b, (M2,), jnp.float32, minval=-bound2, maxval=bound2)
    y2 = jax.block_until_ready(pallas_linear(x2, w2, b2))
    y2_ref = (np.asarray(x2, np.float64) @ np.asarray(w2, np.float64).T
              + np.asarray(b2, np.float64))
    assert np.allclose(np.asarray(y2), y2_ref, rtol=1e-4, atol=1e-4)

    # Exercise the K-reduction fallback kernel directly (4 K steps).
    y3 = jax.block_until_ready(
        _pallas_linear_kred(x2, w2, b2.reshape(1, M2), 128, 256, 256))
    assert np.allclose(np.asarray(y3), y2_ref, rtol=1e-4, atol=1e-4)

    print("KERNEL_OK")
</pallas_src>

<mosaic_0001>
module attributes {stable_mosaic.version = 11 : i64} {
  func.func @_linear_kres_kernel(%arg0: i32, %arg1: i32, %arg2: memref<16x256xf32, #tpu.memory_space<vmem>>, %arg3: memref<128x256xf32, #tpu.memory_space<vmem>>, %arg4: memref<1x128xf32, #tpu.memory_space<vmem>>, %arg5: memref<16x128xf32, #tpu.memory_space<vmem>>) attributes {dimension_semantics = [#tpu.dimension_semantics<parallel>, #tpu.dimension_semantics<parallel>], iteration_bounds = array<i64: 1, 1>, scalar_prefetch = 0 : i64, scratch_operands = 0 : i64, tpu.core_type = #tpu.core_type<tc>, window_params = [{transform_indices = @transform_0, window_bounds = array<i64: 16, 256>}, {transform_indices = @transform_1, window_bounds = array<i64: 128, 256>}, {transform_indices = @transform_2, window_bounds = array<i64: 1, 128>}, {transform_indices = @transform_3, window_bounds = array<i64: 16, 128>}]} {
    %c0 = arith.constant 0 : index
    %c0_0 = arith.constant 0 : index
    %0 = vector.load %arg2[%c0, %c0_0] : memref<16x256xf32, #tpu.memory_space<vmem>>, vector<16x256xf32>
    %c0_1 = arith.constant 0 : index
    %c0_2 = arith.constant 0 : index
    %1 = vector.load %arg3[%c0_1, %c0_2] : memref<128x256xf32, #tpu.memory_space<vmem>>, vector<128x256xf32>
    %cst = arith.constant dense<0.000000e+00> : vector<16x128xf32>
    %2 = tpu.matmul %0, %1, %cst {dimension_numbers = #tpu.dot_dimension_numbers<[1], [1], [0], [0], [0, 0, 1, 0], [], []>} : vector<16x256xf32>, vector<128x256xf32>, vector<16x128xf32> -> vector<16x128xf32>
    %c0_3 = arith.constant 0 : index
    %c0_4 = arith.constant 0 : index
    %3 = vector.load %arg4[%c0_3, %c0_4] : memref<1x128xf32, #tpu.memory_space<vmem>>, vector<1x128xf32>
    %4 = vector.broadcast %3 : vector<1x128xf32> to vector<16x128xf32>
    %5 = arith.addf %2, %4 : vector<16x128xf32>
    %c0_5 = arith.constant 0 : index
    %c0_6 = arith.constant 0 : index
    %6 = vector.load %arg5[%c0_5, %c0_6] : memref<16x128xf32, #tpu.memory_space<vmem>>, vector<16x128xf32>
    tpu.vector_store %arg5[%c0_5, %c0_6], %5 {strides = array<i32>} : memref<16x128xf32, #tpu.memory_space<vmem>>, vector<16x128xf32>,
    return
  }
  func.func @transform_0(%arg0: i32, %arg1: i32) -> (i32, i32) {
    %c0_i32 = arith.constant 0 : i32
    %c0_i32_0 = arith.constant 0 : i32
    return %arg0, %c0_i32 : i32, i32
  }
  func.func @transform_1(%arg0: i32, %arg1: i32) -> (i32, i32) {
    %c0_i32 = arith.constant 0 : i32
    %c0_i32_0 = arith.constant 0 : i32
    return %arg1, %c0_i32 : i32, i32
  }
  func.func @transform_2(%arg0: i32, %arg1: i32) -> (i32, i32) {
    %c0_i32 = arith.constant 0 : i32
    %c0_i32_0 = arith.constant 0 : i32
    return %c0_i32, %arg1 : i32, i32
  }
  func.func @transform_3(%arg0: i32, %arg1: i32) -> (i32, i32) {
    %c0_i32 = arith.constant 0 : i32
    return %arg0, %arg1 : i32, i32
  }
}

</mosaic_0001>

<bundles_post_ra>
// kernel: pallas_linear.1
= control target key start
LH: loop header
LB: loop body
LE: loop exit
PB: predicated region body
PF: predicated region fallthrough
CT: control target
= control target key end

     0   :  { %8 = vsyncpa [#allocation3], 0  ;;  %s375_s0 = inlined_call_operand.hbm [shape: f32[16,256], index: 0, kind: input, shape index: {}]   ;;  %s376_s1 = inlined_call_operand.hbm [shape: f32[128,256], index: 1, kind: input, shape index: {}]   ;;  %s377_s2 = inlined_call_operand.vmem [shape: f32[1,128], index: 2, kind: input, shape index: {}]   ;;  %s378_s3 = inlined_call_operand.hbm [shape: f32[16,128], index: 3, kind: output, shape index: {}]  }
   0x1   :  { %9 = vsyncpa [#allocation6], 0 }
   0x2   :  { %10 = vsyncpa [#allocation4], 0  ;;  %s309_s12 = smov [#allocation2]   ;;  %s237_s16 = scalar_lea.hbm %s375_s0, 512 }
   0x3   :  { %s16_s13 = sshll.u32 %s309_s12, 4  ;;  %p238_p0 = scmp.ne.s32.totalorder %s375_s0, %s237_s16  ;;  %s17_s13 = int_to_ptr.vmem [resolvable:$true] %s16_s13 }
   0x4   :  { %p241_p1 = scmp.lt.u32.totalorder %s237_s16, %s375_s0 }
   0x6   :  { %p243_p2 = pnand %p241_p1, %p238_p0 }
   0x8   :  { %246 = shalt.err (!%p243_p2)
}
   0x9   :  { %s247_s21 = scalar_lea.vmem %s17_s13, 512  ;;  %p252_p4 = scmp.lt.s32.totalorder %s17_s13, %s17_s13 }
   0xa   :  { %p248_p3 = scmp.ne.s32.totalorder %s17_s13, %s247_s21  ;;  %p253_p5 = scmp.lt.s32.totalorder %s247_s21, %s247_s21 }
   0xc   :  { %p254_p6 = por %p253_p5, %p252_p4 }
   0xe   :  { %p255_p7 = pnand %p254_p6, %p248_p3 }
  0x10   :  { %258 = shalt.err (!%p255_p7)
}
  0x11   :  { %s310_s22 = smov 256   ;;  %s311_s23 = smov 16  }
  0x12   :  { %22 = dma.hbm_to_vmem [thread:$0]  %s375_s0, 512, %s17_s13, [#allocation3], %s310_s22, %s310_s22, %s311_s23  }
  0x13   :  { %s312_s26 = smov [#allocation5]   ;;  %s259_s30 = scalar_lea.hbm %s376_s1, 4096 }
  0x14   :  { %s28_s27 = sshll.u32 %s312_s26, 4  ;;  %p260_p8 = scmp.ne.s32.totalorder %s376_s1, %s259_s30  ;;  %s29_s27 = int_to_ptr.vmem [resolvable:$true] %s28_s27 }
  0x15   :  { %p263_p9 = scmp.lt.u32.totalorder %s259_s30, %s376_s1 }
  0x17   :  { %p265_p10 = pnand %p263_p9, %p260_p8 }
  0x19   :  { %268 = shalt.err (!%p265_p10)
}
  0x1a   :  { %s269_s8 = scalar_lea.vmem %s29_s27, 4096  ;;  %p274_p12 = scmp.lt.s32.totalorder %s29_s27, %s29_s27 }
  0x1b   :  { %p270_p11 = scmp.ne.s32.totalorder %s29_s27, %s269_s8  ;;  %p275_p13 = scmp.lt.s32.totalorder %s269_s8, %s269_s8 }
  0x1d   :  { %p276_p0 = por %p275_p13, %p274_p12 }
  0x1f   :  { %p277_p1 = pnand %p276_p0, %p270_p11 }
  0x21   :  { %280 = shalt.err (!%p277_p1)
}
  0x22   :  { %34 = dma.hbm_to_vmem [thread:$0]  %s376_s1, 4096, %s29_s27, [#allocation6], %s310_s22, %s310_s22, %s311_s23  }
  0x23   :  { %303 = dma.done.wait [#allocation3], 512  }
  0x24   :  { %304 = vsyncadd [#allocation3], 4294966784 }
  0x25   :  { %305 = dma.done.wait [#allocation6], 4096  }
  0x26   :  { %306 = vsyncadd [#allocation6], 4294963200  ;;  %v48_v0 = vld [vmem:[#allocation5 + $0x8] sm:$0xff]  ;;  %v50_v1 = vld [vmem:[#allocation5 + $0x18] sm:$0xff]  ;;  %s313_s1 = smov [#allocation7]  }
  0x27   :  { %v47_v2 = vld [vmem:[#allocation5] sm:$0xff]  ;;  %v182_v3 = vpack.c.bf16 %v50_v1, %v48_v0  ;;  %v49_v4 = vld [vmem:[#allocation5 + $0x10] sm:$0xff]  ;;  %v52_v5 = vld [vmem:[#allocation5 + $0x28] sm:$0xff]  ;;  %s168_s10 = sshll.u32 %s313_s1, 4  ;;  %s169_s10 = int_to_ptr.vmem [resolvable:$true] %s168_s10 }
  0x28   :  { %v54_v6 = vld [vmem:[#allocation5 + $0x38] sm:$0xff]  ;;  %v184_v7 = vpack.c.bf16 %v49_v4, %v47_v2  ;;  %v51_v9 = vld [vmem:[#allocation5 + $0x20] sm:$0xff]  ;;  %v53_v10 = vld [vmem:[#allocation5 + $0x30] sm:$0xff]  ;;  %s281_s13 = scalar_lea.vmem %s169_s10, 256  ;;  %p286_p3 = scmp.lt.s32.totalorder %s169_s10, %s169_s10 }
  0x29   :  { %v186_v8 = vpack.c.bf16 %v54_v6, %v52_v5  ;;  %183 = vmatprep.subr.bf16.mxu0 %v182_v3  ;;  %214 = vmatprep.subr.bf16.mxu1 %v182_v3  ;;  %v56_v11 = vld [vmem:[#allocation5 + $0x48] sm:$0xff]  ;;  %v58_v12 = vld [vmem:[#allocation5 + $0x58] sm:$0xff]  ;;  %v188_v13 = vpack.c.bf16 %v53_v10, %v51_v9  ;;  %v55_v17 = vld [vmem:[#allocation5 + $0x40] sm:$0xff]  ;;  %p282_p2 = scmp.ne.s32.totalorder %s169_s10, %s281_s13  ;;  %p287_p4 = scmp.lt.s32.totalorder %s281_s13, %s281_s13 }
  0x2a   :  { %185 = vmatpush1.bf16.xpose.msra.mxu0 %v184_v7  ;;  %222 = vmatpush1.bf16.xpose.msra.mxu1 %v184_v7  ;;  %v190_v14 = vpack.c.bf16 %v58_v12, %v56_v11  ;;  %v44_v15 = vld [vmem:[#allocation2 + $0x8] sm:$0xff]  ;;  %v46_v16 = vld [vmem:[#allocation2 + $0x18] sm:$0xff]  ;;  %v57_v18 = vld [vmem:[#allocation5 + $0x50] sm:$0xff] }
  0x2b   :  { %187 = vmatprep.subr.bf16.mxu0 %v186_v8  ;;  %215 = vmatprep.subr.bf16.mxu1 %v186_v8  ;;  %v60_v19 = vld [vmem:[#allocation5 + $0x68] sm:$0xff]  ;;  %v62_v20 = vld [vmem:[#allocation5 + $0x78] sm:$0xff]  ;;  %v192_v21 = vpack.c.bf16 %v57_v18, %v55_v17  ;;  %v59_v23 = vld [vmem:[#allocation5 + $0x60] sm:$0xff]  ;;  %p288_p5 = por %p287_p4, %p286_p3 }
  0x2c   :  { %150 = vmatprep.mubr.f32.mxu0 %v44_v15  ;;  %155 = vmatprep.mubr.f32.mxu1 %v46_v16  ;;  %v194_v22 = vpack.c.bf16 %v62_v20, %v60_v19  ;;  %v61_v24 = vld [vmem:[#allocation5 + $0x70] sm:$0xff]  ;;  %v64_v25 = vld [vmem:[#allocation5 + $0x88] sm:$0xff]  ;;  %v66_v26 = vld [vmem:[#allocation5 + $0x98] sm:$0xff] }
  0x2d   :  { %v196_v27 = vpack.c.bf16 %v61_v24, %v59_v23  ;;  %v198_v28 = vpack.c.bf16 %v66_v26, %v64_v25  ;;  %v63_v29 = vld [vmem:[#allocation5 + $0x80] sm:$0xff]  ;;  %v65_v30 = vld [vmem:[#allocation5 + $0x90] sm:$0xff]  ;;  %v68_v31 = vld [vmem:[#allocation5 + $0xa8] sm:$0xff]  ;;  %p289_p6 = pnand %p288_p5, %p282_p2 }
  0x2e   :  { %v70_v32 = vld [vmem:[#allocation5 + $0xb8] sm:$0xff]  ;;  %v200_v33 = vpack.c.bf16 %v65_v30, %v63_v29  ;;  %v67_v35 = vld [vmem:[#allocation5 + $0xa0] sm:$0xff]  ;;  %v69_v36 = vld [vmem:[#allocation5 + $0xb0] sm:$0xff] }
  0x2f   :  { %v202_v34 = vpack.c.bf16 %v70_v32, %v68_v31  ;;  %v72_v37 = vld [vmem:[#allocation5 + $0xc8] sm:$0xff]  ;;  %v74_v38 = vld [vmem:[#allocation5 + $0xd8] sm:$0xff]  ;;  %v204_v39 = vpack.c.bf16 %v69_v36, %v67_v35  ;;  %v71_v41 = vld [vmem:[#allocation5 + $0xc0] sm:$0xff] }
  0x30   :  { %v206_v40 = vpack.c.bf16 %v74_v38, %v72_v37  ;;  %v73_v42 = vld [vmem:[#allocation5 + $0xd0] sm:$0xff]  ;;  %v76_v43 = vld [vmem:[#allocation5 + $0xe8] sm:$0xff]  ;;  %v78_v44 = vld [vmem:[#allocation5 + $0xf8] sm:$0xff] }
  0x31   :  { %v208_v45 = vpack.c.bf16 %v73_v42, %v71_v41  ;;  %v210_v46 = vpack.c.bf16 %v78_v44, %v76_v43  ;;  %v75_v47 = vld [vmem:[#allocation5 + $0xe0] sm:$0xff]  ;;  %v77_v48 = vld [vmem:[#allocation5 + $0xf0] sm:$0xff] }
  0x32   :  { %189 = vmatpush1.bf16.xpose.msra.mxu0 %v188_v13  ;;  %223 = vmatpush1.bf16.xpose.msra.mxu1 %v188_v13  ;;  %v212_v49 = vpack.c.bf16 %v77_v48, %v75_v47  ;;  %v43_v50 = vld [vmem:[#allocation2] sm:$0xff]  ;;  %v45_v51 = vld [vmem:[#allocation2 + $0x10] sm:$0xff] }
  0x33   :  { %191 = vmatprep.subr.bf16.mxu0 %v190_v14  ;;  %216 = vmatprep.subr.bf16.mxu1 %v190_v14  ;;  %v181_v52 = vld [vmem:[%s377_s2] ss:$0 sm:$0xff] }
  0x3a   :  { %193 = vmatpush1.bf16.xpose.msra.mxu0 %v192_v21  ;;  %224 = vmatpush1.bf16.xpose.msra.mxu1 %v192_v21 }
  0x3b   :  { %195 = vmatprep.subr.bf16.mxu0 %v194_v22  ;;  %217 = vmatprep.subr.bf16.mxu1 %v194_v22 }
  0x42   :  { %197 = vmatpush1.bf16.xpose.msra.mxu0 %v196_v27  ;;  %225 = vmatpush1.bf16.xpose.msra.mxu1 %v196_v27 }
  0x43   :  { %199 = vmatprep.subr.bf16.mxu0 %v198_v28  ;;  %218 = vmatprep.subr.bf16.mxu1 %v198_v28 }
  0x4a   :  { %201 = vmatpush1.bf16.xpose.msra.mxu0 %v200_v33  ;;  %226 = vmatpush1.bf16.xpose.msra.mxu1 %v200_v33 }
  0x4b   :  { %203 = vmatprep.subr.bf16.mxu0 %v202_v34  ;;  %219 = vmatprep.subr.bf16.mxu1 %v202_v34 }
  0x52   :  { %205 = vmatpush1.bf16.xpose.msra.mxu0 %v204_v39  ;;  %227 = vmatpush1.bf16.xpose.msra.mxu1 %v204_v39 }
  0x53   :  { %207 = vmatprep.subr.bf16.mxu0 %v206_v40  ;;  %220 = vmatprep.subr.bf16.mxu1 %v206_v40 }
  0x5a   :  { %209 = vmatpush1.bf16.xpose.msra.mxu0 %v208_v45  ;;  %228 = vmatpush1.bf16.xpose.msra.mxu1 %v208_v45 }
  0x5b   :  { %211 = vmatprep.subr.bf16.mxu0 %v210_v46  ;;  %221 = vmatprep.subr.bf16.mxu1 %v210_v46 }
  0x62   :  { %213 = vmatpush1.bf16.xpose.msra.mxu0 %v212_v49  ;;  %229 = vmatpush1.bf16.xpose.msra.mxu1 %v212_v49 }
  0x69   :  { %151 = vmatmul.mubr.f32.vlgmr.msra.gmra.mrb[0].mxu0 %v43_v50  ;;  %156 = vmatmul.mubr.f32.vlgmr.msra.gmra.mrb[0].mxu1 %v45_v51 }
 0x13c   :  { %v152_v53 = vpop.f32.mrb[0].mxu0  ;;  %v157_v54 = vpop.f32.mrb[0].mxu1 }
 0x13d   :  { %v153_v55 = vadd.f32 %v181_v52, %v152_v53  ;;  %v158_v56 = vadd.f32 %v181_v52, %v157_v54  ;;  %v154_v57 = vpop.f32.mrb[1].mxu0  ;;  %v159_v58 = vpop.f32.mrb[1].mxu1 }
 0x13f   :  { %161 = vst [vmem:[#allocation7] sm:$0xff] %v153_v55  ;;  %162 = vst [vmem:[#allocation7 + $0x8] sm:$0xff] %v158_v56 }
 0x140   :  { %292 = shalt.err (!%p289_p6)
}
 0x141   :  { %s293_s2 = scalar_lea.hbm %s378_s3, 256 }
 0x142   :  { %p294_p7 = scmp.ne.s32.totalorder %s378_s3, %s293_s2  ;;  %p297_p8 = scmp.lt.u32.totalorder %s293_s2, %s378_s3 }
 0x144   :  { %p299_p9 = pnand %p297_p8, %p294_p7 }
 0x146   :  { %302 = shalt.err (!%p299_p9)
}
 0x147   :  { %s314_s20 = smov 128   ;;  %s315_s21 = smov 8  }
 0x148   :  { %174 = dma.vmem_to_hbm [thread:$0]  %s169_s10, 256, %s378_s3, [#allocation4], %s314_s20, %s314_s20, %s315_s21  }
 0x149   :  { %307 = dma.done.wait [#allocation4], 256  }
 0x14a   :  { %308 = vsyncadd [#allocation4], 4294967040 }
 0x14b   :  { %178 = vsyncpa [#allocation3], 1 }
 0x14c   :  { %179 = vsyncpa [#allocation6], 1 }
 0x14d   :  { %180 = vsyncpa [#allocation4], 1 }

</bundles_post_ra>
